<compile_context>
chip_gen: v5e
topology: v5e:2x2
jax: 0.10.0
libtpu: 0.0.40
codegen_flags: <defaults>
</compile_context>

<pallas_src>
import functools

import jax
import jax.numpy as jnp
from jax.experimental import pallas as pl
from jax.experimental.pallas import tpu as pltpu

EPS = 1e-5


def _layernorm_kernel(x_ref, scale_ref, shift_ref, o_ref):
    # x_ref: (tm, D), scale/shift: (1, D), o_ref: (tm, D)
    x = x_ref[...].astype(jnp.float32)
    mean = jnp.mean(x, axis=-1, keepdims=True)
    centered = x - mean
    var = jnp.mean(centered * centered, axis=-1, keepdims=True)  # unbiased=False
    norm = centered * jax.lax.rsqrt(var + EPS)  # rsqrt -> EUP slot (free under DMA)
    out = scale_ref[...].astype(jnp.float32) * norm + shift_ref[...].astype(jnp.float32)
    o_ref[...] = out.astype(o_ref.dtype)


@functools.partial(jax.jit, static_argnames=("block_rows",))
def layernorm_pallas(x, scale, shift, block_rows=1024):
    """LayerNorm over the last axis of x, matching the PyTorch module semantics."""
    orig_shape = x.shape
    d = orig_shape[-1]
    x2 = x.reshape(-1, d)
    n = x2.shape[0]

    # Pick the row-tile size:
    #  - if the whole row count fits in one block, use the full extent
    #    (full-array dims are exempt from the (8,128) divisibility rule);
    #  - otherwise keep the tile sublane-aligned (multiple of 8; the 1024
    #    default is also a multiple of 16 for bf16 row packing).
    if n <= block_rows:
        tm = n
    else:
        tm = max(8, (block_rows // 8) * 8)

    grid = (pl.cdiv(n, tm),)

    scale2 = scale.reshape(1, d)
    shift2 = shift.reshape(1, d)

    out = pl.pallas_call(
        _layernorm_kernel,
        out_shape=jax.ShapeDtypeStruct((n, d), x.dtype),
        grid_spec=pl.GridSpec(
            grid=grid,
            in_specs=[
                pl.BlockSpec((tm, d), lambda i: (i, 0)),
                pl.BlockSpec((1, d), lambda i: (0, 0)),
                pl.BlockSpec((1, d), lambda i: (0, 0)),
            ],
            out_specs=pl.BlockSpec((tm, d), lambda i: (i, 0)),
        ),
        compiler_params=pltpu.CompilerParams(
            dimension_semantics=("parallel",),
        ),
    )(x2, scale2, shift2)

    return out.reshape(orig_shape)


def layernorm_ref(x, scale, shift):
    xf = x.astype(jnp.float32)
    mean = jnp.mean(xf, axis=-1, keepdims=True)
    var = jnp.mean((xf - mean) ** 2, axis=-1, keepdims=True)
    norm = (xf - mean) / jnp.sqrt(var + EPS)
    return (scale * norm + shift).astype(x.dtype)


if __name__ == "__main__":
    key = jax.random.PRNGKey(0)

    # Primary shape implied by the module's usage: x = torch.rand(2, 4, 768)
    B, S, D = 2, 4, 768
    x = jax.random.normal(key, (B, S, D), dtype=jnp.float32)
    scale = jnp.ones((D,), dtype=jnp.float32)
    shift = jnp.zeros((D,), dtype=jnp.float32)

    out = layernorm_pallas(x, scale, shift)
    out = jax.block_until_ready(out)
    ref = layernorm_ref(x, scale, shift)
    assert out.shape == x.shape
    assert jnp.allclose(out, ref, atol=1e-5, rtol=1e-5), "mismatch vs reference (2,4,768)"

    # Secondary check matching `ln = LayerNorm(emb_dim=5)(torch.randn(2, 5))`.
    key2 = jax.random.PRNGKey(0)
    x_small = jax.random.normal(key2, (2, 5), dtype=jnp.float32)
    scale5 = jnp.ones((5,), dtype=jnp.float32)
    shift5 = jnp.zeros((5,), dtype=jnp.float32)
    out_small = jax.block_until_ready(layernorm_pallas(x_small, scale5, shift5))
    ref_small = layernorm_ref(x_small, scale5, shift5)
    assert jnp.allclose(out_small, ref_small, atol=1e-5, rtol=1e-5), "mismatch vs reference (2,5)"

    print("KERNEL_OK")
</pallas_src>

<mosaic_0001>
module attributes {stable_mosaic.version = 11 : i64} {
  func.func @_layernorm_kernel(%arg0: i32, %arg1: memref<8x768xf32, #tpu.memory_space<vmem>>, %arg2: memref<1x768xf32, #tpu.memory_space<vmem>>, %arg3: memref<1x768xf32, #tpu.memory_space<vmem>>, %arg4: memref<8x768xf32, #tpu.memory_space<vmem>>) attributes {dimension_semantics = [#tpu.dimension_semantics<parallel>], iteration_bounds = array<i64: 1>, scalar_prefetch = 0 : i64, scratch_operands = 0 : i64, tpu.core_type = #tpu.core_type<tc>, window_params = [{transform_indices = @transform_0, window_bounds = array<i64: 8, 768>}, {pipeline_mode = #tpu.pipeline_mode<synchronous>, transform_indices = @transform_1, window_bounds = array<i64: 1, 768>}, {pipeline_mode = #tpu.pipeline_mode<synchronous>, transform_indices = @transform_2, window_bounds = array<i64: 1, 768>}, {transform_indices = @transform_3, window_bounds = array<i64: 8, 768>}]} {
    %c0 = arith.constant 0 : index
    %c0_0 = arith.constant 0 : index
    %0 = vector.load %arg1[%c0, %c0_0] : memref<8x768xf32, #tpu.memory_space<vmem>>, vector<8x768xf32>
    %cst = arith.constant dense<0.000000e+00> : vector<8xf32>
    %1 = vector.multi_reduction <add>, %0, %cst [1] : vector<8x768xf32> to vector<8xf32>
    %2 = vector.shape_cast %1 : vector<8xf32> to vector<8x1xf32>
    %cst_1 = arith.constant 7.680000e+02 : f32
    %3 = vector.broadcast %cst_1 : f32 to vector<8x1xf32>
    %4 = arith.divf %2, %3 : vector<8x1xf32>
    %5 = vector.broadcast %4 : vector<8x1xf32> to vector<8x768xf32>
    %6 = arith.subf %0, %5 : vector<8x768xf32>
    %7 = arith.mulf %6, %6 : vector<8x768xf32>
    %cst_2 = arith.constant dense<0.000000e+00> : vector<8xf32>
    %8 = vector.multi_reduction <add>, %7, %cst_2 [1] : vector<8x768xf32> to vector<8xf32>
    %9 = vector.shape_cast %8 : vector<8xf32> to vector<8x1xf32>
    %cst_3 = arith.constant 7.680000e+02 : f32
    %10 = vector.broadcast %cst_3 : f32 to vector<8x1xf32>
    %11 = arith.divf %9, %10 : vector<8x1xf32>
    %cst_4 = arith.constant 9.99999974E-6 : f32
    %12 = vector.broadcast %cst_4 : f32 to vector<8x1xf32>
    %13 = arith.addf %11, %12 : vector<8x1xf32>
    %14 = math.rsqrt %13 : vector<8x1xf32>
    %15 = vector.broadcast %14 : vector<8x1xf32> to vector<8x768xf32>
    %16 = arith.mulf %6, %15 : vector<8x768xf32>
    %c0_5 = arith.constant 0 : index
    %c0_6 = arith.constant 0 : index
    %17 = vector.load %arg2[%c0_5, %c0_6] : memref<1x768xf32, #tpu.memory_space<vmem>>, vector<1x768xf32>
    %18 = vector.broadcast %17 : vector<1x768xf32> to vector<8x768xf32>
    %19 = arith.mulf %18, %16 : vector<8x768xf32>
    %c0_7 = arith.constant 0 : index
    %c0_8 = arith.constant 0 : index
    %20 = vector.load %arg3[%c0_7, %c0_8] : memref<1x768xf32, #tpu.memory_space<vmem>>, vector<1x768xf32>
    %21 = vector.broadcast %20 : vector<1x768xf32> to vector<8x768xf32>
    %22 = arith.addf %19, %21 : vector<8x768xf32>
    %c0_9 = arith.constant 0 : index
    %c0_10 = arith.constant 0 : index
    %23 = vector.load %arg4[%c0_9, %c0_10] : memref<8x768xf32, #tpu.memory_space<vmem>>, vector<8x768xf32>
    tpu.vector_store %arg4[%c0_9, %c0_10], %22 {strides = array<i32>} : memref<8x768xf32, #tpu.memory_space<vmem>>, vector<8x768xf32>,
    return
  }
  func.func @transform_0(%arg0: i32) -> (i32, i32) {
    %c0_i32 = arith.constant 0 : i32
    %c0_i32_0 = arith.constant 0 : i32
    return %arg0, %c0_i32 : i32, i32
  }
  func.func @transform_1(%arg0: i32) -> (i32, i32) {
    %c0_i32 = arith.constant 0 : i32
    %c0_i32_0 = arith.constant 0 : i32
    %c0_i32_1 = arith.constant 0 : i32
    return %c0_i32, %c0_i32_0 : i32, i32
  }
  func.func @transform_2(%arg0: i32) -> (i32, i32) {
    %c0_i32 = arith.constant 0 : i32
    %c0_i32_0 = arith.constant 0 : i32
    %c0_i32_1 = arith.constant 0 : i32
    return %c0_i32, %c0_i32_0 : i32, i32
  }
  func.func @transform_3(%arg0: i32) -> (i32, i32) {
    %c0_i32 = arith.constant 0 : i32
    %c0_i32_0 = arith.constant 0 : i32
    return %arg0, %c0_i32 : i32, i32
  }
}

</mosaic_0001>

<bundles_post_ra>
// kernel: layernorm_pallas.1
= control target key start
LH: loop header
LB: loop body
LE: loop exit
PB: predicated region body
PF: predicated region fallthrough
CT: control target
= control target key end

     0   :  { %v127_v11 = vmov 768.0   ;;  %s190_s0 = inlined_call_operand.vmem [shape: f32[8,768], index: 0, kind: input, shape index: {}]   ;;  %s191_s1 = inlined_call_operand.vmem [shape: f32[1,768], index: 1, kind: input, shape index: {}]   ;;  %s192_s2 = inlined_call_operand.vmem [shape: f32[1,768], index: 2, kind: input, shape index: {}]   ;;  %s193_s3 = inlined_call_operand.vmem [shape: f32[8,768], index: 3, kind: output, shape index: {}]  }
   0x1   :  { %v14_v0 = vld [vmem:[%s190_s0] sm:$0xff]  ;;  %v15_v1 = vld [vmem:[%s190_s0 + $0x8] sm:$0xff]  ;;  %v16_v2 = vld [vmem:[%s190_s0 + $0x10] sm:$0xff]  ;;  %123 = vrcp.f32 %v127_v11 }
   0x2   :  { %v20_v3 = vadd.f32 %v15_v1, %v14_v0  ;;  %v17_v4 = vld [vmem:[%s190_s0 + $0x18] sm:$0xff]  ;;  %v18_v6 = vld [vmem:[%s190_s0 + $0x20] sm:$0xff]  ;;  %v19_v8 = vld [vmem:[%s190_s0 + $0x28] sm:$0xff] }
   0x3   :  { %v72_v44 = vld [vmem:[%s191_s1] sm:$0x3f] }
   0x4   :  { %v21_v5 = vadd.f32 %v20_v3, %v16_v2  ;;  %v92_v46 = vld [vmem:[%s192_s2] sm:$0x3f]  ;;  %v74_v47 = vperm.slane %v72_v44, 0  ;;  %v75_v48 = vperm.slane %v72_v44, 1  ;;  %v76_v50 = vperm.slane %v72_v44, 2 }
   0x5   :  { %v77_v51 = vperm.slane %v72_v44, 3  ;;  %v78_v52 = vperm.slane %v72_v44, 4  ;;  %v79_v53 = vperm.slane %v72_v44, 5  ;;  %v94_v54 = vperm.slane %v92_v46, 0 }
   0x6   :  { %v22_v7 = vadd.f32 %v21_v5, %v17_v4  ;;  %v95_v55 = vperm.slane %v92_v46, 1  ;;  %v96_v56 = vperm.slane %v92_v46, 2  ;;  %v97_v62 = vperm.slane %v92_v46, 3 }
   0x7   :  { %v124_v12 = vpop.eup %123  ;;  %v98_v63 = vperm.slane %v92_v46, 4 }
   0x8   :  { %v23_v9 = vadd.f32 %v22_v7, %v18_v6  ;;  %v28_v13 = vmul.f32 768.0, %v124_v12  ;;  %vm32_vm0 = vweird.f32 %v124_v12 }
   0xa   :  { %v24_v10 = vadd.f32 %v23_v9, %v19_v8  ;;  %v29_v14 = vsub.f32 1.0, %v28_v13 }
   0xc   :  { %25 = vadd.xlane.f32.xlu0 %v24_v10  ;;  %v30_v15 = vmul.f32 %v124_v12, %v29_v14 }
   0xe   :  { %v31_v16 = vadd.f32 %v124_v12, %v30_v15 }
  0x10   :  { %v33_v17 = vsel %vm32_vm0, %v124_v12, %v31_v16 }
  0x7f   :  { %v26_v18 = vpop.xlane.xlu0 %25 }
  0x80   :  { %v34_v19 = vmul.f32 %v33_v17, %v26_v18 }
  0x82   :  { %v35_v20 = vsub.f32 %v14_v0, %v34_v19  ;;  %v36_v21 = vsub.f32 %v15_v1, %v34_v19  ;;  %v37_v22 = vsub.f32 %v16_v2, %v34_v19  ;;  %v38_v23 = vsub.f32 %v17_v4, %v34_v19 }
  0x83   :  { %v39_v26 = vsub.f32 %v18_v6, %v34_v19  ;;  %v40_v29 = vsub.f32 %v19_v8, %v34_v19  ;;  %v99_v6 = vperm.slane %v92_v46, 5 }
  0x84   :  { %v41_v24 = vmul.f32 %v35_v20, %v35_v20  ;;  %v42_v25 = vmul.f32 %v36_v21, %v36_v21  ;;  %v43_v27 = vmul.f32 %v37_v22, %v37_v22  ;;  %v44_v30 = vmul.f32 %v38_v23, %v38_v23 }
  0x85   :  { %v45_v32 = vmul.f32 %v39_v26, %v39_v26  ;;  %v46_v34 = vmul.f32 %v40_v29, %v40_v29 }
  0x86   :  { %v47_v28 = vadd.f32 %v42_v25, %v41_v24 }
  0x88   :  { %v48_v31 = vadd.f32 %v47_v28, %v43_v27 }
  0x8a   :  { %v49_v33 = vadd.f32 %v48_v31, %v44_v30 }
  0x8c   :  { %v50_v35 = vadd.f32 %v49_v33, %v45_v32 }
  0x8e   :  { %v51_v36 = vadd.f32 %v50_v35, %v46_v34 }
  0x90   :  { %52 = vadd.xlane.f32.xlu0 %v51_v36 }
 0x103   :  { %v53_v37 = vpop.xlane.xlu0 %52 }
 0x104   :  { %v54_v38 = vmul.f32 %v53_v37, %v33_v17 }
 0x106   :  { %v55_v39 = vadd.f32 1e-05, %v54_v38 }
 0x108   :  { %125 = vrsqrt.f32 %v55_v39  ;;  %vm62_vm2 = vweird.f32 %v55_v39 }
 0x10e   :  { %v126_v40 = vpop.eup %125 }
 0x10f   :  { %v57_v41 = vmul.f32 %v126_v40, %v55_v39  ;;  %vm63_vm1 = vweird.f32 %v126_v40 }
 0x110   :  { %vm64_vm3 = vmor %vm62_vm2, %vm63_vm1 }
 0x111   :  { %v58_v42 = vmul.f32 %v126_v40, %v57_v41 }
 0x113   :  { %v59_v43 = vmul.f32 0.5, %v58_v42 }
 0x115   :  { %v60_v45 = vsub.f32 1.5, %v59_v43 }
 0x117   :  { %v61_v49 = vmul.f32 %v126_v40, %v60_v45 }
 0x119   :  { %v65_v57 = vsel %vm64_vm3, %v126_v40, %v61_v49 }
 0x11a   :  { %v66_v58 = vmul.f32 %v65_v57, %v35_v20  ;;  %v67_v59 = vmul.f32 %v65_v57, %v36_v21  ;;  %v68_v60 = vmul.f32 %v65_v57, %v37_v22  ;;  %v69_v61 = vmul.f32 %v65_v57, %v38_v23 }
 0x11b   :  { %v70_v0 = vmul.f32 %v65_v57, %v39_v26  ;;  %v71_v1 = vmul.f32 %v65_v57, %v40_v29 }
 0x11c   :  { %v86_v2 = vmul.f32 %v74_v47, %v66_v58  ;;  %v87_v3 = vmul.f32 %v75_v48, %v67_v59  ;;  %v88_v4 = vmul.f32 %v76_v50, %v68_v60  ;;  %v89_v5 = vmul.f32 %v77_v51, %v69_v61 }
 0x11d   :  { %v90_v7 = vmul.f32 %v78_v52, %v70_v0  ;;  %v91_v8 = vmul.f32 %v79_v53, %v71_v1 }
 0x11e   :  { %v106_v9 = vadd.f32 %v94_v54, %v86_v2  ;;  %v107_v10 = vadd.f32 %v95_v55, %v87_v3  ;;  %v108_v11 = vadd.f32 %v96_v56, %v88_v4  ;;  %v109_v12 = vadd.f32 %v97_v62, %v89_v5 }
 0x11f   :  { %v110_v13 = vadd.f32 %v98_v63, %v90_v7  ;;  %v111_v14 = vadd.f32 %v99_v6, %v91_v8 }
 0x120   :  { %112 = vst [vmem:[%s193_s3] sm:$0xff] %v106_v9 }
 0x121   :  { %113 = vst [vmem:[%s193_s3 + $0x8] sm:$0xff] %v107_v10 }
 0x122   :  { %114 = vst [vmem:[%s193_s3 + $0x10] sm:$0xff] %v108_v11 }
 0x123   :  { %115 = vst [vmem:[%s193_s3 + $0x18] sm:$0xff] %v109_v12 }
 0x124   :  { %116 = vst [vmem:[%s193_s3 + $0x20] sm:$0xff] %v110_v13 }
 0x125   :  { %117 = vst [vmem:[%s193_s3 + $0x28] sm:$0xff] %v111_v14 }

</bundles_post_ra>
